<compile_context>
chip_gen: v6e
topology: v6e:2x2x1
jax: 0.10.0
libtpu: 0.0.40
codegen_flags: <defaults>
</compile_context>

<pallas_src>
import functools
import math

import jax
import jax.numpy as jnp
from jax.experimental import pallas as pl
from jax.experimental.pallas import tpu as pltpu


# ---------------------------------------------------------------------------
# Kernels
# ---------------------------------------------------------------------------
def _ffn_kernel_acc(x_ref, w13_ref, w2_ref, o_ref, acc_ref):
    """One (tm, dim) row tile x one hid tile; f32 VMEM scratch accumulator."""
    k = pl.program_id(1)                       # hid-tile index (reduction axis)

    @pl.when(k == 0)
    def _init():
        acc_ref[...] = jnp.zeros_like(acc_ref)

    x = x_ref[...]                                                      # (tm, dim)
    h13 = jnp.dot(x, w13_ref[...], preferred_element_type=jnp.float32)  # (tm, 2*tn)
    tn = w13_ref.shape[1] // 2                 # static
    h1 = h13[:, :tn]
    h3 = h13[:, tn:]
    # SiLU with the divide pushed onto the EUP approx slot.
    g = (h1 * pl.reciprocal(1.0 + jnp.exp(-h1), approx=True)) * h3

    acc_ref[...] += jnp.dot(g.astype(w2_ref.dtype), w2_ref[...],
                            preferred_element_type=jnp.float32)         # (tm, dim)

    @pl.when(k == pl.num_programs(1) - 1)
    def _finalize():
        o_ref[...] = acc_ref[...].astype(o_ref.dtype)


def _ffn_kernel_f32out(x_ref, w13_ref, w2_ref, o_ref):
    """Same, but accumulates directly into the resident f32 output block
    (saves tm*dim*4 bytes of VMEM scratch)."""
    k = pl.program_id(1)

    @pl.when(k == 0)
    def _init():
        o_ref[...] = jnp.zeros_like(o_ref)

    x = x_ref[...]
    h13 = jnp.dot(x, w13_ref[...], preferred_element_type=jnp.float32)
    tn = w13_ref.shape[1] // 2
    h1 = h13[:, :tn]
    h3 = h13[:, tn:]
    g = (h1 * pl.reciprocal(1.0 + jnp.exp(-h1), approx=True)) * h3
    o_ref[...] += jnp.dot(g.astype(w2_ref.dtype), w2_ref[...],
                          preferred_element_type=jnp.float32)


# ---------------------------------------------------------------------------
# Generation-aware tile planning
# ---------------------------------------------------------------------------
def _vmem_budget_bytes():
    """Physical VMEM minus ~20% headroom for Mosaic internal scratch."""
    cap = None
    try:
        cap = int(pltpu.get_tpu_info().vmem_capacity_bytes)
    except Exception:
        cap = None
    if not cap:
        cap = 64 * 1024 * 1024        # conservative (v7x-sized) default
    # 128 MiB (v5e/v6e) -> ~102 MiB budget; 64 MiB (v7x) -> ~51 MiB budget.
    return max(int(cap * 0.8), 32 * 1024 * 1024)


def _footprint_bytes(tm, tn, dim, x_itm, w_itm, out_itm, *, wbuf=2, scratch=True):
    """Estimated VMEM working set for one pipelined step."""
    return (2 * tm * dim * x_itm              # x rows (double-buffered)
            + wbuf * dim * 2 * tn * w_itm     # fused [W1|W3]^T tile
            + wbuf * tn * dim * w_itm         # W2^T tile
            + 2 * tm * dim * out_itm          # output block
            + (tm * dim * 4 if scratch else 0))   # f32 accumulator (non-f32 out)


def _plan_tiles(M, dim, hid, *, x_itm, w_itm, out_itm):
    """Pick (tm, tn) that fit the per-generation VMEM budget.

    Priority: largest row tile tm (amortizes full-weight re-streaming from HBM),
    then largest hid tile tn with bounded zero-padding waste.
    """
    budget = _vmem_budget_bytes()
    row_mult = 16 if x_itm == 2 else (32 if x_itm == 1 else 8)
    m_cap = max(row_mult, ((M + row_mult - 1) // row_mult) * row_mult)
    hid128 = ((hid + 127) // 128) * 128
    scratch = out_itm != 4

    tm_cands = sorted(
        {min(t, m_cap) for t in (1024, 512, 256, 128, 64, 32)
         if min(t, m_cap) % row_mult == 0} | {row_mult},
        reverse=True)
    tn_cands = sorted({min(t, hid128) for t in (2048, 1024, 512, 256, 128)},
                      reverse=True)
    waste_cap = max(128, hid128 // 8)

    for tm in tm_cands:
        for prefer_low_waste in (True, False):
            for tn in tn_cands:
                hid_pad = ((hid128 + tn - 1) // tn) * tn
                if prefer_low_waste and (hid_pad - hid128) > waste_cap:
                    continue
                if _footprint_bytes(tm, tn, dim, x_itm, w_itm, out_itm,
                                    wbuf=2, scratch=scratch) <= budget:
                    return tm, tn, budget
    return row_mult, 128, budget


# ---------------------------------------------------------------------------
# Weight preparation (do this ONCE per model, not per forward call)
# ---------------------------------------------------------------------------
def prepare_ffn_weights(w1, w3, w2, tn, dtype=None):
    """Pre-transpose, zero-pad hid to a multiple of tn, and fuse W1/W3.

    w1, w3: (hid, dim); w2: (dim, hid)  -- PyTorch nn.Linear (out, in) layout.
    Returns (w13, w2_t):
      w13 : (dim, 2*hid_pad); hid tile k occupies columns [2*k*tn, 2*(k+1)*tn):
            first tn columns = W1^T chunk k, next tn columns = W3^T chunk k.
      w2_t: (hid_pad, dim)
    Zero-padded hid columns/rows contribute exact zeros to the accumulation.
    """
    hid, dim = w1.shape
    hid_pad = ((hid + tn - 1) // tn) * tn
    if hid_pad != hid:
        pad = hid_pad - hid
        w1 = jnp.pad(w1, ((0, pad), (0, 0)))
        w3 = jnp.pad(w3, ((0, pad), (0, 0)))
        w2 = jnp.pad(w2, ((0, 0), (0, pad)))
    nh = hid_pad // tn
    w1_t = jnp.transpose(w1).reshape(dim, nh, tn)
    w3_t = jnp.transpose(w3).reshape(dim, nh, tn)
    w13 = jnp.concatenate([w1_t, w3_t], axis=2).reshape(dim, 2 * hid_pad)
    w2_t = jnp.transpose(w2)                                            # (hid_pad, dim)
    if dtype is not None:
        w13 = w13.astype(dtype)
        w2_t = w2_t.astype(dtype)
    return w13, w2_t


# ---------------------------------------------------------------------------
# pallas_call wrapper
# ---------------------------------------------------------------------------
@functools.partial(jax.jit,
                   static_argnames=("tm", "tn", "vmem_limit", "weight_buffers"))
def _ffn_apply(x2, w13, w2_t, *, tm, tn, vmem_limit, weight_buffers=2):
    M, dim = x2.shape
    hid_pad = w2_t.shape[0]
    assert hid_pad % tn == 0
    nh = hid_pad // tn

    # Pad rows up to a multiple of tm (padding rows produce garbage we slice off).
    M_pad = ((M + tm - 1) // tm) * tm
    if M_pad != M:
        x2 = jnp.pad(x2, ((0, M_pad - M), (0, 0)))
    row_tiles = M_pad // tm

    f32_out = x2.dtype == jnp.float32
    kernel = _ffn_kernel_f32out if f32_out else _ffn_kernel_acc
    scratch_shapes = [] if f32_out else [pltpu.VMEM((tm, dim), jnp.float32)]

    # Deeper weight pipeline only for the pure weight-streaming (decode) regime.
    wb_kwargs = ({} if weight_buffers == 2
                 else {"pipeline_mode": pl.Buffered(weight_buffers)})

    w_itm = w13.dtype.itemsize
    x_itm = x2.dtype.itemsize
    cost = pl.CostEstimate(
        flops=6 * M_pad * dim * hid_pad,       # gate/up (2*M*d*2h) + down (2*M*h*d)
        transcendentals=M_pad * hid_pad,       # sigmoid
        # Weights are re-streamed from HBM once per row tile.
        bytes_accessed=int(2 * M_pad * dim * x_itm
                           + row_tiles * (w13.size + w2_t.size) * w_itm),
    )

    out = pl.pallas_call(
        kernel,
        out_shape=jax.ShapeDtypeStruct((M_pad, dim), x2.dtype),
        grid_spec=pltpu.PrefetchScalarGridSpec(
            num_scalar_prefetch=0,
            grid=(row_tiles, nh),                                   # reduction axis last
            in_specs=[
                pl.BlockSpec((tm, dim), lambda i, k: (i, 0)),       # x rows
                pl.BlockSpec((dim, 2 * tn), lambda i, k: (0, k),    # fused [W1|W3]^T
                             **wb_kwargs),
                pl.BlockSpec((tn, dim), lambda i, k: (k, 0),        # W2^T tile
                             **wb_kwargs),
            ],
            out_specs=pl.BlockSpec((tm, dim), lambda i, k: (i, 0)), # resident across k
            scratch_shapes=scratch_shapes,
        ),
        compiler_params=pltpu.CompilerParams(
            dimension_semantics=("parallel", "arbitrary"),
            vmem_limit_bytes=int(vmem_limit),
        ),
        cost_estimate=cost,
    )(x2, w13, w2_t)

    if M_pad != M:
        out = out[:M]
    return out


def feed_forward(x, w1, w3, w2, *, compute_dtype=None):
    """x: (B, S, dim); w1, w3: (hid, dim); w2: (dim, hid) in PyTorch (out, in) layout.

    compute_dtype=jnp.bfloat16 casts activations + weights to bf16 on the MXU
    (f32 accumulation is kept inside the kernel). For production, hoist
    _plan_tiles + prepare_ffn_weights out of the step function and reuse.
    """
    B, S, dim = x.shape
    hid = w1.shape[0]
    cdt = jnp.dtype(compute_dtype) if compute_dtype is not None else jnp.dtype(x.dtype)
    x2 = x.reshape(B * S, dim).astype(cdt)

    tm, tn, vmem_limit = _plan_tiles(
        B * S, dim, hid,
        x_itm=cdt.itemsize, w_itm=cdt.itemsize, out_itm=cdt.itemsize)

    w13, w2_t = prepare_ffn_weights(w1, w3, w2, tn, dtype=cdt)
    nh = w2_t.shape[0] // tn
    row_tiles = ((B * S + tm - 1) // tm)

    weight_buffers = 2
    if row_tiles == 1 and nh >= 3:
        fp3 = _footprint_bytes(tm, tn, dim, cdt.itemsize, cdt.itemsize,
                               cdt.itemsize, wbuf=3,
                               scratch=(cdt != jnp.dtype(jnp.float32)))
        if fp3 <= vmem_limit:
            weight_buffers = 3

    out = _ffn_apply(x2, w13, w2_t, tm=tm, tn=tn,
                     vmem_limit=vmem_limit, weight_buffers=weight_buffers)
    return out.reshape(B, S, dim).astype(x.dtype)


# ---------------------------------------------------------------------------
# Demo / correctness check
# ---------------------------------------------------------------------------
def _init_linear(key, out_features, in_features, dtype=jnp.float32):
    # nn.Linear default init: U(-1/sqrt(in), 1/sqrt(in))
    bound = 1.0 / math.sqrt(in_features)
    return jax.random.uniform(key, (out_features, in_features),
                              minval=-bound, maxval=bound, dtype=dtype)


if __name__ == "__main__":
    # Config (small but (8,128)-friendly): dim=128, intermediate_size=256,
    # n_layer=5, lidx=2  ->  hid = 256*(2/4 + 0.5) = 256; round to /128 -> 256.
    dim = 128
    intermediate_size = 256
    n_layer = 5
    lidx = 2
    hid = intermediate_size * (lidx / (n_layer - 1) + 0.5)
    hid = round(hid / 128) * 128

    B, S = 2, 8
    key = jax.random.PRNGKey(0)
    kx, k1, k3, k2 = jax.random.split(key, 4)

    x = jax.random.normal(kx, (B, S, dim), dtype=jnp.float32)
    w1 = _init_linear(k1, hid, dim)   # (hid, dim)
    w3 = _init_linear(k3, hid, dim)   # (hid, dim)
    w2 = _init_linear(k2, dim, hid)   # (dim, hid)

    out = feed_forward(x, w1, w3, w2)
    out = jax.block_until_ready(out)

    # Pure-JAX reference check (tolerance accounts for the EUP approx reciprocal
    # used inside the kernel's SiLU).
    h1 = x @ w1.T
    h3 = x @ w3.T
    ref = (h1 * jax.nn.sigmoid(h1) * h3) @ w2.T
    assert out.shape == (B, S, dim)
    assert jnp.allclose(out, ref, atol=5e-3, rtol=5e-3), "mismatch vs reference"

    print("KERNEL_OK")
</pallas_src>

<mosaic_0001>
module attributes {stable_mosaic.version = 11 : i64} {
  func.func @_ffn_kernel_f32out(%arg0: i32, %arg1: i32, %arg2: memref<16x128xf32, #tpu.memory_space<vmem>>, %arg3: memref<128x512xf32, #tpu.memory_space<vmem>>, %arg4: memref<256x128xf32, #tpu.memory_space<vmem>>, %arg5: memref<16x128xf32, #tpu.memory_space<vmem>>) attributes {dimension_semantics = [#tpu.dimension_semantics<parallel>, #tpu.dimension_semantics<arbitrary>], iteration_bounds = array<i64: 1, 1>, scalar_prefetch = 0 : i64, scratch_operands = 0 : i64, tpu.core_type = #tpu.core_type<tc>, window_params = [{transform_indices = @transform_0, window_bounds = array<i64: 16, 128>}, {transform_indices = @transform_1, window_bounds = array<i64: 128, 512>}, {transform_indices = @transform_2, window_bounds = array<i64: 256, 128>}, {transform_indices = @transform_3, window_bounds = array<i64: 16, 128>}]} {
    %c0_i32 = arith.constant 0 : i32
    %0 = arith.cmpi eq, %arg1, %c0_i32 : i32
    %1 = arith.extui %0 : i1 to i32
    %c0_i32_0 = arith.constant 0 : i32
    %2 = arith.cmpi ne, %1, %c0_i32_0 : i32
    scf.if %2 {
      %cst_13 = arith.constant 0.000000e+00 : f32
      %21 = vector.broadcast %cst_13 : f32 to vector<16x128xf32>
      %c0_14 = arith.constant 0 : index
      %c0_15 = arith.constant 0 : index
      %22 = vector.load %arg5[%c0_14, %c0_15] : memref<16x128xf32, #tpu.memory_space<vmem>>, vector<16x128xf32>
      tpu.vector_store %arg5[%c0_14, %c0_15], %21 {strides = array<i32>} : memref<16x128xf32, #tpu.memory_space<vmem>>, vector<16x128xf32>,
    } else {
    }
    %c0 = arith.constant 0 : index
    %c0_1 = arith.constant 0 : index
    %3 = vector.load %arg2[%c0, %c0_1] : memref<16x128xf32, #tpu.memory_space<vmem>>, vector<16x128xf32>
    %c0_2 = arith.constant 0 : index
    %c0_3 = arith.constant 0 : index
    %4 = vector.load %arg3[%c0_2, %c0_3] : memref<128x512xf32, #tpu.memory_space<vmem>>, vector<128x512xf32>
    %cst = arith.constant dense<0.000000e+00> : vector<16x512xf32>
    %5 = tpu.matmul %3, %4, %cst {dimension_numbers = #tpu.dot_dimension_numbers<[1], [0], [0], [1], [0, 0, 1, 1], [], []>} : vector<16x128xf32>, vector<128x512xf32>, vector<16x512xf32> -> vector<16x512xf32>
    %6 = vector.extract_strided_slice %5 {offsets = [0, 0], sizes = [16, 256], strides = [1, 1]} : vector<16x512xf32> to vector<16x256xf32>
    %7 = vector.extract_strided_slice %5 {offsets = [0, 256], sizes = [16, 256], strides = [1, 1]} : vector<16x512xf32> to vector<16x256xf32>
    %cst_4 = arith.constant 0.000000e+00 : f32
    %8 = vector.broadcast %cst_4 : f32 to vector<16x256xf32>
    %9 = arith.subf %8, %6 : vector<16x256xf32>
    %10 = math.exp %9 : vector<16x256xf32>
    %cst_5 = arith.constant 1.000000e+00 : f32
    %11 = vector.broadcast %cst_5 : f32 to vector<16x256xf32>
    %12 = arith.addf %11, %10 : vector<16x256xf32>
    %13 = tpu.reciprocal %12 {approx = true} : vector<16x256xf32> -> vector<16x256xf32>
    %14 = arith.mulf %6, %13 : vector<16x256xf32>
    %15 = arith.mulf %14, %7 : vector<16x256xf32>
    %c0_6 = arith.constant 0 : index
    %c0_7 = arith.constant 0 : index
    %16 = vector.load %arg5[%c0_6, %c0_7] : memref<16x128xf32, #tpu.memory_space<vmem>>, vector<16x128xf32>
    %c0_8 = arith.constant 0 : index
    %c0_9 = arith.constant 0 : index
    %17 = vector.load %arg4[%c0_8, %c0_9] : memref<256x128xf32, #tpu.memory_space<vmem>>, vector<256x128xf32>
    %cst_10 = arith.constant dense<0.000000e+00> : vector<16x128xf32>
    %18 = tpu.matmul %15, %17, %cst_10 {dimension_numbers = #tpu.dot_dimension_numbers<[1], [0], [0], [1], [0, 0, 1, 1], [], []>} : vector<16x256xf32>, vector<256x128xf32>, vector<16x128xf32> -> vector<16x128xf32>
    %19 = arith.addf %16, %18 : vector<16x128xf32>
    %c0_11 = arith.constant 0 : index
    %c0_12 = arith.constant 0 : index
    %20 = vector.load %arg5[%c0_11, %c0_12] : memref<16x128xf32, #tpu.memory_space<vmem>>, vector<16x128xf32>
    tpu.vector_store %arg5[%c0_11, %c0_12], %19 {strides = array<i32>} : memref<16x128xf32, #tpu.memory_space<vmem>>, vector<16x128xf32>,
    return
  }
  func.func @transform_0(%arg0: i32, %arg1: i32) -> (i32, i32) {
    %c0_i32 = arith.constant 0 : i32
    %c0_i32_0 = arith.constant 0 : i32
    return %arg0, %c0_i32 : i32, i32
  }
  func.func @transform_1(%arg0: i32, %arg1: i32) -> (i32, i32) {
    %c0_i32 = arith.constant 0 : i32
    %c0_i32_0 = arith.constant 0 : i32
    return %c0_i32, %arg1 : i32, i32
  }
  func.func @transform_2(%arg0: i32, %arg1: i32) -> (i32, i32) {
    %c0_i32 = arith.constant 0 : i32
    %c0_i32_0 = arith.constant 0 : i32
    return %arg1, %c0_i32 : i32, i32
  }
  func.func @transform_3(%arg0: i32, %arg1: i32) -> (i32, i32) {
    %c0_i32 = arith.constant 0 : i32
    %c0_i32_0 = arith.constant 0 : i32
    return %arg0, %c0_i32 : i32, i32
  }
}

</mosaic_0001>

<bundles_post_ra>
// kernel: _ffn_apply.1
= control target key start
LH: loop header
LB: loop body
LE: loop exit
PB: predicated region body
PF: predicated region fallthrough
CT: control target
= control target key end

     0   :  { %8 = vsyncpa [#allocation3], 0  ;;  %s676_s0 = inlined_call_operand.hbm [shape: f32[16,128], index: 0, kind: input, shape index: {}]   ;;  %s677_s1 = inlined_call_operand.hbm [shape: f32[128,512], index: 1, kind: input, shape index: {}]   ;;  %s678_s2 = inlined_call_operand.hbm [shape: f32[256,128], index: 2, kind: input, shape index: {}]   ;;  %s679_s3 = inlined_call_operand.hbm [shape: f32[16,128], index: 3, kind: output, shape index: {}]  }
   0x1   :  { %9 = vsyncpa [#allocation6], 0 }
   0x2   :  { %10 = vsyncpa [#allocation4], 0  ;;  %s622_s12 = smov [#allocation5]  }
   0x3   :  { %s28_s13 = sshll.u32 %s622_s12, 4  ;;  %s29_s13 = int_to_ptr.vmem [resolvable:$true] %s28_s13 }
   0x4   :  { %s544_s14 = scalar_lea.vmem %s29_s13, 8192  ;;  %p549_p1 = scmp.lt.s32.totalorder %s29_s13, %s29_s13 }
   0x5   :  { %p545_p0 = scmp.ne.s32.totalorder %s29_s13, %s544_s14  ;;  %p550_p2 = scmp.lt.s32.totalorder %s544_s14, %s544_s14 }
   0x7   :  { %p551_p3 = por %p550_p2, %p549_p1 }
   0x9   :  { %p552_p4 = pnand %p551_p3, %p545_p0 }
   0xb   :  { %555 = shalt.err (!%p552_p4)
}
   0xc   :  { %s623_s15 = smov 512   ;;  %s624_s16 = smov 32  }
   0xd   :  { %34 = dma.hbm_to_vmem [thread:$0]  %s677_s1, 8192, %s29_s13, [#allocation6], %s623_s15, %s623_s15, %s624_s16  }
   0xe   :  { %s625_s19 = smov [#allocation2]  }
   0xf   :  { %s16_s20 = sshll.u32 %s625_s19, 4  ;;  %s17_s20 = int_to_ptr.vmem [resolvable:$true] %s16_s20 }
  0x10   :  { %s564_s21 = scalar_lea.vmem %s17_s20, 256  ;;  %p569_p6 = scmp.lt.s32.totalorder %s17_s20, %s17_s20 }
  0x11   :  { %p565_p5 = scmp.ne.s32.totalorder %s17_s20, %s564_s21  ;;  %p570_p7 = scmp.lt.s32.totalorder %s564_s21, %s564_s21 }
  0x13   :  { %p571_p8 = por %p570_p7, %p569_p6 }
  0x15   :  { %p572_p9 = pnand %p571_p8, %p565_p5 }
  0x17   :  { %575 = shalt.err (!%p572_p9)
}
  0x18   :  { %s626_s22 = smov 128   ;;  %s627_s23 = smov 8  }
  0x19   :  { %22 = dma.hbm_to_vmem [thread:$0]  %s676_s0, 256, %s17_s20, [#allocation3], %s626_s22, %s626_s22, %s627_s23  }
  0x1a   :  { %s628_s1 = smov [#allocation7]  }
  0x1b   :  { %s40_s26 = sshll.u32 %s628_s1, 4  ;;  %s41_s26 = int_to_ptr.vmem [resolvable:$true] %s40_s26 }
  0x1c   :  { %s584_s27 = scalar_lea.vmem %s41_s26, 4096  ;;  %p589_p11 = scmp.lt.s32.totalorder %s41_s26, %s41_s26 }
  0x1d   :  { %p585_p10 = scmp.ne.s32.totalorder %s41_s26, %s584_s27  ;;  %p590_p12 = scmp.lt.s32.totalorder %s584_s27, %s584_s27 }
  0x1f   :  { %p591_p13 = por %p590_p12, %p589_p11 }
  0x21   :  { %p592_p0 = pnand %p591_p13, %p585_p10 }
  0x23   :  { %595 = shalt.err (!%p592_p0)
}
  0x24   :  { %46 = dma.hbm_to_vmem [thread:$0]  %s678_s2, 4096, %s41_s26, [#allocation6], %s626_s22, %s626_s22, %s627_s23  }
  0x25   :  { %616 = dma.done.wait [#allocation3], 256  }
  0x26   :  { %617 = vsyncadd [#allocation3], 4294967040 }
  0x27   :  { %618 = dma.done.wait [#allocation6], 12288  }
  0x28   :  { %619 = vsyncadd [#allocation6], 4294955008  ;;  %v629_v0 = vmov 0.0   ;;  %v125_v1 = vld [vmem:[#allocation5 + $0x1e8] sm:$0xff]  ;;  %v124_v2 = vld [vmem:[#allocation5 + $0x1e0] sm:$0xff]  ;;  %s630_s0 = smov [#allocation8]  }
  0x29   :  { %192 = vmatprep.mubr.f32.mxu0 %v629_v0  ;;  %269 = vmatprep.mubr.f32.mxu1 %v629_v0  ;;  %v121_v3 = vld [vmem:[#allocation5 + $0x1c8] sm:$0xff]  ;;  %v120_v4 = vld [vmem:[#allocation5 + $0x1c0] sm:$0xff]  ;;  %v127_v15 = vld [vmem:[#allocation5 + $0x1f8] sm:$0xff]  ;;  %s428_s2 = sshll.u32 %s630_s0, 4  ;;  %s429_s2 = int_to_ptr.vmem [resolvable:$true] %s428_s2 }
  0x2a   :  { %128 = vmatprep.subr.mxu0 %v125_v1  ;;  %v117_v5 = vld [vmem:[#allocation5 + $0x1a8] sm:$0xff]  ;;  %v116_v6 = vld [vmem:[#allocation5 + $0x1a0] sm:$0xff]  ;;  %v126_v16 = vld [vmem:[#allocation5 + $0x1f0] sm:$0xff]  ;;  %205 = vmatprep.subr.mxu1 %v127_v15  ;;  %s596_s30 = scalar_lea.vmem %s429_s2, 256  ;;  %p601_p2 = scmp.lt.s32.totalorder %s429_s2, %s429_s2 }
  0x2b   :  { %129 = vmatpush1.msra.mxu0 %v124_v2  ;;  %v113_v7 = vld [vmem:[#allocation5 + $0x188] sm:$0xff]  ;;  %v112_v8 = vld [vmem:[#allocation5 + $0x180] sm:$0xff]  ;;  %v123_v18 = vld [vmem:[#allocation5 + $0x1d8] sm:$0xff]  ;;  %206 = vmatpush1.msra.mxu1 %v126_v16  ;;  %p597_p1 = scmp.ne.s32.totalorder %s429_s2, %s596_s30  ;;  %p602_p3 = scmp.lt.s32.totalorder %s596_s30, %s596_s30 }
  0x2c   :  { %130 = vmatprep.subr.mxu0 %v121_v3  ;;  %v109_v9 = vld [vmem:[#allocation5 + $0x168] sm:$0xff]  ;;  %v108_v10 = vld [vmem:[#allocation5 + $0x160] sm:$0xff]  ;;  %v122_v19 = vld [vmem:[#allocation5 + $0x1d0] sm:$0xff]  ;;  %207 = vmatprep.subr.mxu1 %v123_v18 }
  0x2d   :  { %131 = vmatpush1.msra.mxu0 %v120_v4  ;;  %v105_v11 = vld [vmem:[#allocation5 + $0x148] sm:$0xff]  ;;  %v104_v12 = vld [vmem:[#allocation5 + $0x140] sm:$0xff]  ;;  %v119_v21 = vld [vmem:[#allocation5 + $0x1b8] sm:$0xff]  ;;  %208 = vmatpush1.msra.mxu1 %v122_v19  ;;  %p603_p4 = por %p602_p3, %p601_p2 }
  0x2e   :  { %132 = vmatprep.subr.mxu0 %v117_v5  ;;  %v101_v13 = vld [vmem:[#allocation5 + $0x128] sm:$0xff]  ;;  %v100_v14 = vld [vmem:[#allocation5 + $0x120] sm:$0xff]  ;;  %v118_v23 = vld [vmem:[#allocation5 + $0x1b0] sm:$0xff]  ;;  %209 = vmatprep.subr.mxu1 %v119_v21 }
  0x2f   :  { %133 = vmatpush1.msra.mxu0 %v116_v6  ;;  %v97_v17 = vld [vmem:[#allocation5 + $0x108] sm:$0xff]  ;;  %v96_v20 = vld [vmem:[#allocation5 + $0x100] sm:$0xff]  ;;  %v115_v25 = vld [vmem:[#allocation5 + $0x198] sm:$0xff]  ;;  %210 = vmatpush1.msra.mxu1 %v118_v23  ;;  %p604_p5 = pnand %p603_p4, %p597_p1 }
  0x30   :  { %134 = vmatprep.subr.mxu0 %v113_v7  ;;  %v93_v22 = vld [vmem:[#allocation5 + $0xe8] sm:$0xff]  ;;  %v92_v24 = vld [vmem:[#allocation5 + $0xe0] sm:$0xff]  ;;  %v114_v27 = vld [vmem:[#allocation5 + $0x190] sm:$0xff]  ;;  %211 = vmatprep.subr.mxu1 %v115_v25 }
  0x31   :  { %135 = vmatpush1.msra.mxu0 %v112_v8  ;;  %v89_v26 = vld [vmem:[#allocation5 + $0xc8] sm:$0xff]  ;;  %v88_v28 = vld [vmem:[#allocation5 + $0xc0] sm:$0xff]  ;;  %v111_v29 = vld [vmem:[#allocation5 + $0x178] sm:$0xff]  ;;  %212 = vmatpush1.msra.mxu1 %v114_v27 }
  0x32   :  { %136 = vmatprep.subr.mxu0 %v109_v9  ;;  %v85_v30 = vld [vmem:[#allocation5 + $0xa8] sm:$0xff]  ;;  %v110_v31 = vld [vmem:[#allocation5 + $0x170] sm:$0xff]  ;;  %v84_v32 = vld [vmem:[#allocation5 + $0xa0] sm:$0xff]  ;;  %213 = vmatprep.subr.mxu1 %v111_v29 }
  0x33   :  { %137 = vmatpush1.msra.mxu0 %v108_v10  ;;  %v107_v33 = vld [vmem:[#allocation5 + $0x158] sm:$0xff]  ;;  %v81_v34 = vld [vmem:[#allocation5 + $0x88] sm:$0xff]  ;;  %v106_v35 = vld [vmem:[#allocation5 + $0x150] sm:$0xff]  ;;  %214 = vmatpush1.msra.mxu1 %v110_v31 }
  0x34   :  { %138 = vmatprep.subr.mxu0 %v105_v11  ;;  %v80_v36 = vld [vmem:[#allocation5 + $0x80] sm:$0xff]  ;;  %v103_v37 = vld [vmem:[#allocation5 + $0x138] sm:$0xff]  ;;  %v77_v38 = vld [vmem:[#allocation5 + $0x68] sm:$0xff]  ;;  %215 = vmatprep.subr.mxu1 %v107_v33 }
  0x35   :  { %139 = vmatpush1.msra.mxu0 %v104_v12  ;;  %v102_v39 = vld [vmem:[#allocation5 + $0x130] sm:$0xff]  ;;  %v76_v40 = vld [vmem:[#allocation5 + $0x60] sm:$0xff]  ;;  %216 = vmatpush1.msra.mxu1 %v106_v35  ;;  %v99_v41 = vld [vmem:[#allocation5 + $0x118] sm:$0xff] }
  0x36   :  { %140 = vmatprep.subr.mxu0 %v101_v13  ;;  %v73_v42 = vld [vmem:[#allocation5 + $0x48] sm:$0xff]  ;;  %217 = vmatprep.subr.mxu1 %v103_v37  ;;  %v98_v43 = vld [vmem:[#allocation5 + $0x110] sm:$0xff]  ;;  %v72_v44 = vld [vmem:[#allocation5 + $0x40] sm:$0xff] }
  0x37   :  { %141 = vmatpush1.msra.mxu0 %v100_v14  ;;  %218 = vmatpush1.msra.mxu1 %v102_v39  ;;  %v95_v45 = vld [vmem:[#allocation5 + $0xf8] sm:$0xff]  ;;  %v69_v46 = vld [vmem:[#allocation5 + $0x28] sm:$0xff]  ;;  %v94_v47 = vld [vmem:[#allocation5 + $0xf0] sm:$0xff] }
  0x38   :  { %142 = vmatprep.subr.mxu0 %v97_v17  ;;  %219 = vmatprep.subr.mxu1 %v99_v41  ;;  %v68_v48 = vld [vmem:[#allocation5 + $0x20] sm:$0xff]  ;;  %v91_v49 = vld [vmem:[#allocation5 + $0xd8] sm:$0xff]  ;;  %v65_v50 = vld [vmem:[#allocation5 + $0x8] sm:$0xff] }
  0x39   :  { %143 = vmatpush1.msra.mxu0 %v96_v20  ;;  %220 = vmatpush1.msra.mxu1 %v98_v43  ;;  %v90_v51 = vld [vmem:[#allocation5 + $0xd0] sm:$0xff]  ;;  %v64_v52 = vld [vmem:[#allocation5] sm:$0xff]  ;;  %v87_v53 = vld [vmem:[#allocation5 + $0xb8] sm:$0xff] }
  0x3a   :  { %144 = vmatprep.subr.mxu0 %v93_v22  ;;  %221 = vmatprep.subr.mxu1 %v95_v45  ;;  %v62_v54 = vld [vmem:[#allocation2] sm:$0xff]  ;;  %v83_v56 = vld [vmem:[#allocation5 + $0x98] sm:$0xff]  ;;  %v341_v8 = vld [vmem:[#allocation7 + $0xe8] sm:$0xff] }
  0x3b   :  { %145 = vmatpush1.msra.mxu0 %v92_v24  ;;  %222 = vmatpush1.msra.mxu1 %v94_v47  ;;  %v86_v55 = vld [vmem:[#allocation5 + $0xb0] sm:$0xff]  ;;  %v79_v58 = vld [vmem:[#allocation5 + $0x78] sm:$0xff]  ;;  %v325_v9 = vld [vmem:[#allocation7 + $0x68] sm:$0xff] }
  0x3c   :  { %146 = vmatprep.subr.mxu0 %v89_v26  ;;  %223 = vmatprep.subr.mxu1 %v91_v49  ;;  %v82_v57 = vld [vmem:[#allocation5 + $0x90] sm:$0xff]  ;;  %v63_v59 = vld [vmem:[#allocation2 + $0x8] sm:$0xff]  ;;  %v340_v10 = vld [vmem:[#allocation7 + $0xe0] sm:$0xff] }
  0x3d   :  { %147 = vmatpush1.msra.mxu0 %v88_v28  ;;  %224 = vmatpush1.msra.mxu1 %v90_v51  ;;  %v78_v60 = vld [vmem:[#allocation5 + $0x70] sm:$0xff]  ;;  %v75_v61 = vld [vmem:[#allocation5 + $0x58] sm:$0xff]  ;;  %v337_v15 = vld [vmem:[#allocation7 + $0xc8] sm:$0xff] }
  0x3e   :  { %148 = vmatprep.subr.mxu0 %v85_v30  ;;  %225 = vmatprep.subr.mxu1 %v87_v53  ;;  %v74_v62 = vld [vmem:[#allocation5 + $0x50] sm:$0xff]  ;;  %v71_v63 = vld [vmem:[#allocation5 + $0x38] sm:$0xff]  ;;  %v321_v16 = vld [vmem:[#allocation7 + $0x48] sm:$0xff] }
  0x3f   :  { %149 = vmatpush1.msra.mxu0 %v84_v32  ;;  %226 = vmatpush1.msra.mxu1 %v86_v55  ;;  %v70_v1 = vld [vmem:[#allocation5 + $0x30] sm:$0xff]  ;;  %v67_v2 = vld [vmem:[#allocation5 + $0x18] sm:$0xff]  ;;  %v336_v17 = vld [vmem:[#allocation7 + $0xc0] sm:$0xff] }
  0x40   :  { %150 = vmatprep.subr.mxu0 %v81_v34  ;;  %227 = vmatprep.subr.mxu1 %v83_v56  ;;  %v66_v3 = vld [vmem:[#allocation5 + $0x10] sm:$0xff]  ;;  %v343_v4 = vld [vmem:[#allocation7 + $0xf8] sm:$0xff]  ;;  %v320_v18 = vld [vmem:[#allocation7 + $0x40] sm:$0xff] }
  0x41   :  { %151 = vmatpush1.msra.mxu0 %v80_v36  ;;  %228 = vmatpush1.msra.mxu1 %v82_v57  ;;  %v327_v5 = vld [vmem:[#allocation7 + $0x78] sm:$0xff]  ;;  %v342_v6 = vld [vmem:[#allocation7 + $0xf0] sm:$0xff]  ;;  %v333_v23 = vld [vmem:[#allocation7 + $0xa8] sm:$0xff] }
  0x42   :  { %152 = vmatprep.subr.mxu0 %v77_v38  ;;  %229 = vmatprep.subr.mxu1 %v79_v58  ;;  %v326_v7 = vld [vmem:[#allocation7 + $0x70] sm:$0xff]  ;;  %v339_v11 = vld [vmem:[#allocation7 + $0xd8] sm:$0xff]  ;;  %v317_v24 = vld [vmem:[#allocation7 + $0x28] sm:$0xff] }
  0x43   :  { %153 = vmatpush1.msra.mxu0 %v76_v40  ;;  %230 = vmatpush1.msra.mxu1 %v78_v60  ;;  %v323_v12 = vld [vmem:[#allocation7 + $0x58] sm:$0xff]  ;;  %v338_v13 = vld [vmem:[#allocation7 + $0xd0] sm:$0xff]  ;;  %v332_v25 = vld [vmem:[#allocation7 + $0xa0] sm:$0xff] }
  0x44   :  { %154 = vmatprep.subr.mxu0 %v73_v42  ;;  %231 = vmatprep.subr.mxu1 %v75_v61  ;;  %v322_v14 = vld [vmem:[#allocation7 + $0x50] sm:$0xff]  ;;  %v335_v19 = vld [vmem:[#allocation7 + $0xb8] sm:$0xff]  ;;  %v316_v26 = vld [vmem:[#allocation7 + $0x20] sm:$0xff] }
  0x45   :  { %155 = vmatpush1.msra.mxu0 %v72_v44  ;;  %232 = vmatpush1.msra.mxu1 %v74_v62  ;;  %v319_v20 = vld [vmem:[#allocation7 + $0x38] sm:$0xff]  ;;  %v334_v21 = vld [vmem:[#allocation7 + $0xb0] sm:$0xff]  ;;  %v329_v31 = vld [vmem:[#allocation7 + $0x88] sm:$0xff] }
  0x46   :  { %156 = vmatprep.subr.mxu0 %v69_v46  ;;  %233 = vmatprep.subr.mxu1 %v71_v63  ;;  %v318_v22 = vld [vmem:[#allocation7 + $0x30] sm:$0xff]  ;;  %v331_v27 = vld [vmem:[#allocation7 + $0x98] sm:$0xff]  ;;  %v313_v32 = vld [vmem:[#allocation7 + $0x8] sm:$0xff] }
  0x47   :  { %157 = vmatpush1.msra.mxu0 %v68_v48  ;;  %234 = vmatpush1.msra.mxu1 %v70_v1  ;;  %v315_v28 = vld [vmem:[#allocation7 + $0x18] sm:$0xff]  ;;  %v330_v29 = vld [vmem:[#allocation7 + $0x90] sm:$0xff]  ;;  %v328_v33 = vld [vmem:[#allocation7 + $0x80] sm:$0xff] }
  0x48   :  { %158 = vmatprep.subr.mxu0 %v65_v50  ;;  %235 = vmatprep.subr.mxu1 %v67_v2  ;;  %v314_v30 = vld [vmem:[#allocation7 + $0x10] sm:$0xff]  ;;  %v312_v34 = vld [vmem:[#allocation7] sm:$0xff] }
  0x49   :  { %159 = vmatpush1.msra.mxu0 %v64_v52  ;;  %236 = vmatpush1.msra.mxu1 %v66_v3 }
  0x4a   :  { %193 = vmatmul.mubr.f32.vlgmr.msra.gmra.mxu0 %v62_v54  ;;  %270 = vmatmul.mubr.f32.vlgmr.msra.gmra.mxu1 %v62_v54 }
  0x4b   :  { %198 = vmatprep.mubr.f32.mxu0 %v629_v0  ;;  %275 = vmatprep.mubr.f32.mxu1 %v629_v0  ;;  %v324_v0 = vld [vmem:[#allocation7 + $0x60] sm:$0xff] }
  0x4c   :  { %441 = vmatprep.subr.mxu0 %v343_v4  ;;  %479 = vmatprep.subr.mxu1 %v343_v4 }
  0x4d   :  { %442 = vmatpush3.msra.mxu0 %v327_v5  ;;  %495 = vmatpush3.msra.mxu1 %v327_v5 }
  0x4e   :  { %199 = vmatmul.mubr.f32.gmra.mxu0 %v63_v59  ;;  %276 = vmatmul.mubr.f32.gmra.mxu1 %v63_v59 }
  0x4f   :  { %443 = vmatprep.subr.mxu0 %v342_v6  ;;  %480 = vmatprep.subr.mxu1 %v342_v6 }
  0x50   :  { %444 = vmatpush3.msra.mxu0 %v326_v7  ;;  %496 = vmatpush3.msra.mxu1 %v326_v7 }
  0x51   :  { %445 = vmatprep.subr.mxu0 %v341_v8  ;;  %481 = vmatprep.subr.mxu1 %v341_v8 }
  0x52   :  { %446 = vmatpush3.msra.mxu0 %v325_v9  ;;  %497 = vmatpush3.msra.mxu1 %v325_v9 }
  0x53   :  { %447 = vmatprep.subr.mxu0 %v340_v10  ;;  %482 = vmatprep.subr.mxu1 %v340_v10 }
  0x54   :  { %448 = vmatpush3.msra.mxu0 %v324_v0  ;;  %498 = vmatpush3.msra.mxu1 %v324_v0 }
  0x55   :  { %449 = vmatprep.subr.mxu0 %v339_v11  ;;  %483 = vmatprep.subr.mxu1 %v339_v11 }
  0x56   :  { %450 = vmatpush3.msra.mxu0 %v323_v12  ;;  %499 = vmatpush3.msra.mxu1 %v323_v12 }
  0x57   :  { %451 = vmatprep.subr.mxu0 %v338_v13  ;;  %484 = vmatprep.subr.mxu1 %v338_v13 }
  0x58   :  { %452 = vmatpush3.msra.mxu0 %v322_v14  ;;  %500 = vmatpush3.msra.mxu1 %v322_v14 }
  0x59   :  { %453 = vmatprep.subr.mxu0 %v337_v15  ;;  %485 = vmatprep.subr.mxu1 %v337_v15 }
  0x5a   :  { %454 = vmatpush3.msra.mxu0 %v321_v16  ;;  %501 = vmatpush3.msra.mxu1 %v321_v16 }
  0x5b   :  { %455 = vmatprep.subr.mxu0 %v336_v17  ;;  %486 = vmatprep.subr.mxu1 %v336_v17 }
  0x5c   :  { %456 = vmatpush3.msra.mxu0 %v320_v18  ;;  %502 = vmatpush3.msra.mxu1 %v320_v18 }
  0x5d   :  { %457 = vmatprep.subr.mxu0 %v335_v19  ;;  %487 = vmatprep.subr.mxu1 %v335_v19 }
  0x5e   :  { %458 = vmatpush3.msra.mxu0 %v319_v20  ;;  %503 = vmatpush3.msra.mxu1 %v319_v20 }
  0x5f   :  { %459 = vmatprep.subr.mxu0 %v334_v21  ;;  %488 = vmatprep.subr.mxu1 %v334_v21 }
  0x60   :  { %460 = vmatpush3.msra.mxu0 %v318_v22  ;;  %504 = vmatpush3.msra.mxu1 %v318_v22 }
  0x61   :  { %461 = vmatprep.subr.mxu0 %v333_v23  ;;  %489 = vmatprep.subr.mxu1 %v333_v23 }
  0x62   :  { %462 = vmatpush3.msra.mxu0 %v317_v24  ;;  %505 = vmatpush3.msra.mxu1 %v317_v24 }
  0x63   :  { %463 = vmatprep.subr.mxu0 %v332_v25  ;;  %490 = vmatprep.subr.mxu1 %v332_v25 }
  0x64   :  { %464 = vmatpush3.msra.mxu0 %v316_v26  ;;  %506 = vmatpush3.msra.mxu1 %v316_v26 }
  0x65   :  { %465 = vmatprep.subr.mxu0 %v331_v27  ;;  %491 = vmatprep.subr.mxu1 %v331_v27 }
  0x66   :  { %466 = vmatpush3.msra.mxu0 %v315_v28  ;;  %507 = vmatpush3.msra.mxu1 %v315_v28 }
  0x67   :  { %467 = vmatprep.subr.mxu0 %v330_v29  ;;  %492 = vmatprep.subr.mxu1 %v330_v29 }
  0x68   :  { %468 = vmatpush3.msra.mxu0 %v314_v30  ;;  %508 = vmatpush3.msra.mxu1 %v314_v30 }
  0x69   :  { %469 = vmatprep.subr.mxu0 %v329_v31  ;;  %493 = vmatprep.subr.mxu1 %v329_v31 }
  0x6a   :  { %470 = vmatpush3.msra.mxu0 %v313_v32  ;;  %509 = vmatpush3.msra.mxu1 %v313_v32 }
  0x6b   :  { %471 = vmatprep.subr.mxu0 %v328_v33  ;;  %494 = vmatprep.subr.mxu1 %v328_v33 }
  0x6c   :  { %472 = vmatpush3.msra.mxu0 %v312_v34  ;;  %510 = vmatpush3.msra.mxu1 %v312_v34 }
 0x10a   :  { %v194_v35 = vpop.f32.mrf.mxu0  ;;  %v271_v55 = vpop.f32.mrf.mxu1 }
 0x10b   :  { %v282_v36 = vsub.f32 0.0, %v194_v35 }
 0x10c   :  { %v196_v37 = vpop.f32.mrf.mxu0  ;;  %v273_v57 = vpop.f32.mrf.mxu1 }
 0x10d   :  { %v286_v38 = vmul.f32 1.442695, %v282_v36  ;;  %v283_v39 = vsub.f32 0.0, %v196_v37 }
 0x10e   :  { %v200_v40 = vpop.f32.mrf.mxu0  ;;  %v277_v62 = vpop.f32.mrf.mxu1 }
 0x10f   :  { %520 = vpow2.f32 %v286_v38  ;;  %v288_v41 = vmul.f32 1.442695, %v283_v39  ;;  %v284_v42 = vsub.f32 0.0, %v200_v40 }
 0x110   :  { %v202_v43 = vpop.f32.mrf.mxu0  ;;  %v279_v5 = vpop.f32.mrf.mxu1 }
 0x111   :  { %522 = vpow2.f32 %v288_v41  ;;  %v290_v44 = vmul.f32 1.442695, %v284_v42  ;;  %v285_v45 = vsub.f32 0.0, %v202_v43 }
 0x113   :  { %524 = vpow2.f32 %v290_v44  ;;  %v292_v46 = vmul.f32 1.442695, %v285_v45 }
 0x115   :  { %526 = vpow2.f32 %v292_v46 }
 0x11c   :  { %v521_v47 = vpop.eup %520 }
 0x11d   :  { %v294_v48 = vadd.f32 1.0, %v521_v47 }
 0x11e   :  { %v523_v49 = vpop.eup %522 }
 0x11f   :  { %528 = vrcp.f32 %v294_v48  ;;  %v295_v50 = vadd.f32 1.0, %v523_v49 }
 0x120   :  { %v525_v51 = vpop.eup %524 }
 0x121   :  { %530 = vrcp.f32 %v295_v50  ;;  %v296_v52 = vadd.f32 1.0, %v525_v51 }
 0x122   :  { %v527_v53 = vpop.eup %526 }
 0x123   :  { %532 = vrcp.f32 %v296_v52  ;;  %v297_v54 = vadd.f32 1.0, %v527_v53 }
 0x125   :  { %534 = vrcp.f32 %v297_v54 }
 0x12c   :  { %v529_v56 = vpop.eup %528 }
 0x12d   :  { %v302_v59 = vmul.f32 %v529_v56, %v194_v35 }
 0x12e   :  { %v531_v58 = vpop.eup %530 }
 0x12f   :  { %v303_v60 = vmul.f32 %v531_v58, %v196_v37  ;;  %v306_v3 = vmul.f32 %v302_v59, %v271_v55 }
 0x130   :  { %v533_v61 = vpop.eup %532 }
 0x131   :  { %v307_v63 = vmul.f32 %v303_v60, %v273_v57  ;;  %v304_v2 = vmul.f32 %v533_v61, %v200_v40 }
 0x132   :  { %v535_v1 = vpop.eup %534 }
 0x133   :  { %v305_v4 = vmul.f32 %v535_v1, %v202_v43  ;;  %408 = vmatprep.mubr.f32.mxu0 %v307_v63  ;;  %v308_v7 = vmul.f32 %v304_v2, %v277_v62 }
 0x134   :  { %409 = vmatmul.mubr.f32.vlgmr.msra.gmra.mxu0 %v306_v3 }
 0x135   :  { %v309_v6 = vmul.f32 %v305_v4, %v279_v5 }
 0x137   :  { %413 = vmatprep.mubr.f32.mxu1 %v309_v6 }
 0x138   :  { %414 = vmatmul.mubr.f32.vlgmr.msra.gmra.mxu1 %v308_v7 }
 0x1f4   :  { %v473_v8 = vpop.f32.mrf.mxu0 }
 0x1f6   :  { %v474_v9 = vpop.f32.mrf.mxu0 }
 0x1f7   :  { %v475_v10 = vadd.f32 %v474_v9, %v473_v8 }
 0x1f8   :  { %v476_v0 = vpop.f32.mrf.mxu1 }
 0x1f9   :  { %421 = vst [vmem:[#allocation8] sm:$0xff] %v475_v10 }
 0x1fa   :  { %v477_v11 = vpop.f32.mrf.mxu1 }
 0x1fb   :  { %v478_v12 = vadd.f32 %v477_v11, %v476_v0 }
 0x1fd   :  { %422 = vst [vmem:[#allocation8 + $0x8] sm:$0xff] %v478_v12 }
 0x1fe   :  { %607 = shalt.err (!%p604_p5)
}
 0x1ff   :  { %434 = dma.vmem_to_hbm [thread:$0]  %s429_s2, 256, %s679_s3, [#allocation4], %s626_s22, %s626_s22, %s627_s23  }
 0x200   :  { %620 = dma.done.wait [#allocation4], 256  }
 0x201   :  { %621 = vsyncadd [#allocation4], 4294967040 }
 0x202   :  { %438 = vsyncpa [#allocation3], 1 }
 0x203   :  { %439 = vsyncpa [#allocation6], 1 }
 0x204   :  { %440 = vsyncpa [#allocation4], 1 }

</bundles_post_ra>
